<compile_context>
chip_gen: v7x
topology: tpu7x:2x2x1
jax: 0.10.0
libtpu: 0.0.40
codegen_flags: <defaults>
</compile_context>

<pallas_src>
import functools

import jax
import jax.numpy as jnp
from jax.experimental import pallas as pl
from jax.experimental.pallas import tpu as pltpu


def _splines_kernel(x_ref, consts_ref, w_ref, o_ref, *, basis_order,
                    compute_dtype):
    """One lane-dense batch tile.

    x_ref      : (I, Bt)               batch on the lane axis
    consts_ref : (1 + 4*order, I, G)   row 0 = grid; rows 1.. hold, per level,
                                       [g_left, g_right, inv_left, inv_right]
                                       precomputed in the wrapper, padded to G
    w_ref      : (O, Ipad + I*C)       [basis_weights | spline_weights] fused
    o_ref      : (O, Bt)               lane-dense output tile
    """
    cdt = compute_dtype
    x = x_ref[...].astype(jnp.float32)                        # (I, Bt)
    consts = consts_ref[...]                                  # (R, I, G) f32
    w = w_ref[...].astype(cdt)                                # (O, Ipad+I*C)

    i_dim, bt = x.shape
    g_full = consts[0]                                        # (I, G)

    # SiLU branch kept in f32 (v5e has no bf16 VPU/EUP).
    silu = x * jax.nn.sigmoid(x)                              # (I, Bt)

    # Degree-0 basis via a step-function difference.
    xe = x[:, None, :]                                        # (I, 1, Bt)
    step = (xe >= g_full[:, :, None]).astype(cdt)             # (I, G, Bt)
    basis = step[:, :-1, :] - step[:, 1:, :]                  # (I, G-1, Bt)

    xe_c = xe.astype(cdt)
    # Cox-de Boor recursion vectorized over all input features.  All
    # grid-only slices / reciprocals come precomputed (no per-tile divides).
    for k in range(1, basis_order + 1):
        wk = basis.shape[1] - 1                               # = G - 1 - k
        base = 1 + 4 * (k - 1)
        gl = consts[base + 0, :, :wk][:, :, None].astype(cdt)  # (I, wk, 1)
        gr = consts[base + 1, :, :wk][:, :, None].astype(cdt)
        il = consts[base + 2, :, :wk][:, :, None].astype(cdt)
        ir = consts[base + 3, :, :wk][:, :, None].astype(cdt)
        basis = ((xe_c - gl) * il * basis[:, :-1, :]
                 + (gr - xe_c) * ir * basis[:, 1:, :])        # (I, wk, Bt)

    c = basis.shape[1]                                        # C = n_int+order
    basis_flat = basis.reshape(i_dim * c, bt)                 # (I*C, Bt)

    # Single fused MXU matmul: stack [SiLU (zero-padded to 8-aligned sublane
    # count) ; flattened basis] against the fused weight.  Exact.
    i_pad = w.shape[1] - i_dim * c                            # Ipad
    silu_c = silu.astype(cdt)
    if i_pad > i_dim:
        silu_c = jnp.concatenate(
            [silu_c, jnp.zeros((i_pad - i_dim, bt), cdt)], axis=0)
    stacked = jnp.concatenate([silu_c, basis_flat], axis=0)   # (Ipad+I*C, Bt)

    out = jnp.dot(w, stacked, preferred_element_type=jnp.float32)
    o_ref[...] = out.astype(o_ref.dtype)                      # (O, Bt)


def _pick_batch_tile(batch_tile, padded_batch, input_size, output_size, G, C):
    """Lane-dense batch tile from a VMEM formula, vreg-pressure capped, with a
    >=4-tile floor (>=2 tiles per v7x TensorCore when the batch allows)."""
    batch_tile = max(128, (batch_tile // 128) * 128)
    i_pad = 8 * ((input_size + 7) // 8)
    # f32 working set per batch column (lane) inside the kernel:
    #   x + silu (+padded silu) + step (I*G) + basis/left/right peak
    #   (~3*I*(G-2)) + stacked dot operand + out (plus pipeline slack).
    per_col_bytes = 4 * (3 * input_size
                         + input_size * G
                         + 3 * input_size * (G - 2)
                         + (i_pad + input_size * C)
                         + 3 * output_size)
    vmem_budget = 12 * 1024 * 1024          # headroom under the 32 MiB limit
    vmem_cap = max(128, (vmem_budget // per_col_bytes) // 128 * 128)
    bt = min(batch_tile, vmem_cap, 2048, padded_batch)   # 2048: vreg ceiling
    # >=4 grid tiles when possible (v7x megacore + pipelining on all chips).
    bt = min(bt, max(128, (padded_batch // 4) // 128 * 128))
    bt = max(bt, 128)
    # Batch is padded only to 128; shrink bt to an exact divisor so every
    # block is fully valid (terminates at 128, which always divides).
    while padded_batch % bt:
        bt -= 128
    return bt


def splines_forward_feature_major(x_t, grid, basis_weights, splines_weights, *,
                                  basis_order, batch_tile: int = 1024,
                                  use_bf16: bool = False):
    """Feature-major entry point: x_t (I, B) -> (O, B) float32.

    Use this directly between adjacent KAN layers to avoid the (B, I) <-> (I, B)
    transposes that `splines_forward` adds for API compatibility.
    grid: (I, G); basis_weights: (O, I); splines_weights: (O, I, C).
    """
    input_size, batch = x_t.shape
    output_size = basis_weights.shape[0]
    G = grid.shape[1]
    C = splines_weights.shape[2]
    i_pad = 8 * ((input_size + 7) // 8)

    # --- grid-only constants, computed once outside the kernel -------------
    # (pure function of `grid`; in a real layer this would be cached).
    gf = grid.astype(jnp.float32)
    rows = [gf]                                               # row 0: full grid
    for k in range(1, basis_order + 1):
        wk = G - 1 - k
        gl = gf[:, :wk]                      # grid[:, :-(k+1)]
        gr = gf[:, k + 1:]                   # grid[:, k+1:]
        il = 1.0 / (gf[:, k:k + wk] - gl)    # 1/(grid[:,k:-1] - grid[:,:-(k+1)])
        ir = 1.0 / (gr - gf[:, 1:1 + wk])    # 1/(grid[:,k+1:] - grid[:,1:-k])
        pad = ((0, 0), (0, G - wk))
        rows += [jnp.pad(gl, pad), jnp.pad(gr, pad),
                 jnp.pad(il, pad), jnp.pad(ir, pad)]
    consts = jnp.stack(rows, axis=0)         # (1 + 4*order, I, G) f32

    # --- fused weight: [basis_weights (8-padded) | flattened spline weights]
    bw = basis_weights.astype(jnp.float32)
    if i_pad > input_size:
        bw = jnp.pad(bw, ((0, 0), (0, i_pad - input_size)))
    sw_flat = splines_weights.reshape(output_size, input_size * C).astype(jnp.float32)
    w = jnp.concatenate([bw, sw_flat], axis=1)   # (O, Ipad + I*C)

    # --- tiling -------------------------------------------------------------
    padded_batch = pl.cdiv(batch, 128) * 128     # pad only to 128, not to bt
    bt = _pick_batch_tile(batch_tile, padded_batch, input_size, output_size, G, C)
    num_tiles = padded_batch // bt

    x_f = x_t.astype(jnp.float32)
    if padded_batch != batch:
        # NOTE: padded tail columns produce garbage outputs; they are removed
        # by the [:, :batch] slice below.  Never consume the padded output.
        x_f = jnp.pad(x_f, ((0, 0), (0, padded_batch - batch)))

    kernel = functools.partial(
        _splines_kernel, basis_order=basis_order,
        compute_dtype=jnp.bfloat16 if use_bf16 else jnp.float32)

    out_t = pl.pallas_call(
        kernel,
        out_shape=jax.ShapeDtypeStruct((output_size, padded_batch), jnp.float32),
        grid=(num_tiles,),
        in_specs=[
            pl.BlockSpec((input_size, bt), lambda b: (0, b)),      # x tile
            pl.BlockSpec(consts.shape, lambda b: (0, 0, 0)),       # grid consts
            pl.BlockSpec(w.shape, lambda b: (0, 0)),               # fused weight
        ],
        out_specs=pl.BlockSpec((output_size, bt), lambda b: (0, b)),
        compiler_params=pltpu.CompilerParams(
            dimension_semantics=("parallel",),      # megacore split on v7x
            vmem_limit_bytes=32 * 1024 * 1024,      # explicit (v5e default is 16 MiB)
        ),
    )(x_f, consts, w)

    return out_t[:, :batch]                        # (O, B)


def splines_forward(x, grid, basis_weights, splines_weights, *, basis_order,
                    batch_tile: int = 1024, use_bf16: bool = False):
    """PyTorch-compatible API: x (B, I) -> (B, O) float32.

    The two transposes here are pure layout plumbing; chains of KAN layers
    should call `splines_forward_feature_major` to skip them.
    """
    out_t = splines_forward_feature_major(
        x.T, grid, basis_weights, splines_weights,
        basis_order=basis_order, batch_tile=batch_tile, use_bf16=use_bf16)
    return out_t.T


def splines_reference(x, grid, basis_weights, splines_weights, *, basis_order):
    """Pure-JAX port of the PyTorch forward, for correctness checking."""
    silu = x * jax.nn.sigmoid(x)
    basis_out = silu @ basis_weights.T
    xe = x[:, :, None]                                        # (B, I, 1)
    basis = jnp.logical_and(xe >= grid[None, :, :-1],
                            xe < grid[None, :, 1:]).astype(jnp.float32)
    for k in range(1, basis_order + 1):
        basis = (xe - grid[None, :, :-(k + 1)]) \
                / (grid[None, :, k:-1] - grid[None, :, :-(k + 1)]) \
                * basis[:, :, :-1] \
                + (grid[None, :, k + 1:] - xe) \
                / (grid[None, :, k + 1:] - grid[None, :, 1:-k]) \
                * basis[:, :, 1:]
    spline_out = basis.reshape(x.shape[0], -1) \
                 @ splines_weights.reshape(splines_weights.shape[0], -1).T
    return basis_out + spline_out


if __name__ == "__main__":
    # Module hyperparameters (consistent with Splines.__init__); batch large
    # enough to exercise the lane-dense layout and a multi-tile batch grid.
    batch = 512
    input_size = 4
    output_size = 8
    basis_order = 3
    basis_range = (-1.0, 1.0)
    n_intervals = 5

    padding_size = 2 * basis_order + 1
    G = n_intervals + padding_size                 # grid points per input feature
    C = n_intervals + basis_order                  # spline coefficients per (o, i)

    # Buffers / parameters, deterministic init.
    grid = jnp.tile(
        jnp.linspace(basis_range[0], basis_range[1], G, dtype=jnp.float32)[None, :],
        (input_size, 1),
    )                                              # (I, G), strictly increasing

    key = jax.random.PRNGKey(0)
    kx, kb, ks = jax.random.split(key, 3)
    basis_weights = 0.1 * jax.random.normal(kb, (output_size, input_size),
                                            dtype=jnp.float32)
    splines_weights = 0.1 * jax.random.normal(ks, (output_size, input_size, C),
                                              dtype=jnp.float32)

    # Inputs mostly inside the spline domain.  (Inputs outside [grid[0], grid[-1])
    # get an all-zero basis, matching the PyTorch half-open-interval semantics.)
    x = 0.8 * jax.random.normal(kx, (batch, input_size), dtype=jnp.float32)

    out = splines_forward(x, grid, basis_weights, splines_weights,
                          basis_order=basis_order)
    out = jax.block_until_ready(out)

    ref = splines_reference(x, grid, basis_weights, splines_weights,
                            basis_order=basis_order)
    assert out.shape == (batch, output_size)
    assert jnp.allclose(out, ref, atol=1e-5, rtol=1e-4), \
        f"max abs err {jnp.max(jnp.abs(out - ref))}"

    print("KERNEL_OK")
</pallas_src>

<mosaic_0001>
module attributes {stable_mosaic.version = 11 : i64} {
  func.func @_splines_kernel(%arg0: i32, %arg1: memref<4x128xf32, #tpu.memory_space<vmem>>, %arg2: memref<13x4x12xf32, #tpu.memory_space<vmem>>, %arg3: memref<8x40xf32, #tpu.memory_space<vmem>>, %arg4: memref<8x128xf32, #tpu.memory_space<vmem>>) attributes {dimension_semantics = [#tpu.dimension_semantics<parallel>], iteration_bounds = array<i64: 4>, scalar_prefetch = 0 : i64, scratch_operands = 0 : i64, tpu.core_type = #tpu.core_type<tc>, window_params = [{transform_indices = @transform_0, window_bounds = array<i64: 4, 128>}, {pipeline_mode = #tpu.pipeline_mode<synchronous>, transform_indices = @transform_1, window_bounds = array<i64: 13, 4, 12>}, {pipeline_mode = #tpu.pipeline_mode<synchronous>, transform_indices = @transform_2, window_bounds = array<i64: 8, 40>}, {transform_indices = @transform_3, window_bounds = array<i64: 8, 128>}]} {
    %c0 = arith.constant 0 : index
    %c0_0 = arith.constant 0 : index
    %0 = vector.load %arg1[%c0, %c0_0] : memref<4x128xf32, #tpu.memory_space<vmem>>, vector<4x128xf32>
    %c0_1 = arith.constant 0 : index
    %c0_2 = arith.constant 0 : index
    %c0_3 = arith.constant 0 : index
    %1 = vector.load %arg2[%c0_1, %c0_2, %c0_3] : memref<13x4x12xf32, #tpu.memory_space<vmem>>, vector<13x4x12xf32>
    %c0_4 = arith.constant 0 : index
    %c0_5 = arith.constant 0 : index
    %2 = vector.load %arg3[%c0_4, %c0_5] : memref<8x40xf32, #tpu.memory_space<vmem>>, vector<8x40xf32>
    %3 = vector.extract_strided_slice %1 {offsets = [0, 0, 0], sizes = [1, 4, 12], strides = [1, 1, 1]} : vector<13x4x12xf32> to vector<1x4x12xf32>
    %4 = vector.shape_cast %3 : vector<1x4x12xf32> to vector<4x12xf32>
    %5 = arith.negf %0 : vector<4x128xf32>
    %6 = math.exp %5 : vector<4x128xf32>
    %cst = arith.constant 1.000000e+00 : f32
    %7 = vector.broadcast %cst : f32 to vector<4x128xf32>
    %8 = arith.addf %7, %6 : vector<4x128xf32>
    %9 = arith.divf %7, %8 : vector<4x128xf32>
    %10 = arith.mulf %0, %9 : vector<4x128xf32>
    %11 = vector.shape_cast %0 : vector<4x128xf32> to vector<4x1x128xf32>
    %12 = vector.shape_cast %4 : vector<4x12xf32> to vector<4x12x1xf32>
    %13 = vector.broadcast %11 : vector<4x1x128xf32> to vector<4x12x128xf32>
    %14 = vector.broadcast %12 : vector<4x12x1xf32> to vector<4x12x128xf32>
    %15 = arith.cmpf oge, %13, %14 : vector<4x12x128xf32>
    %16 = arith.extui %15 : vector<4x12x128xi1> to vector<4x12x128xi32>
    %17 = arith.sitofp %16 : vector<4x12x128xi32> to vector<4x12x128xf32>
    %18 = vector.extract_strided_slice %17 {offsets = [0, 0, 0], sizes = [4, 11, 128], strides = [1, 1, 1]} : vector<4x12x128xf32> to vector<4x11x128xf32>
    %19 = vector.extract_strided_slice %17 {offsets = [0, 1, 0], sizes = [4, 11, 128], strides = [1, 1, 1]} : vector<4x12x128xf32> to vector<4x11x128xf32>
    %20 = arith.subf %18, %19 : vector<4x11x128xf32>
    %21 = vector.extract_strided_slice %1 {offsets = [1, 0, 0], sizes = [1, 4, 10], strides = [1, 1, 1]} : vector<13x4x12xf32> to vector<1x4x10xf32>
    %22 = vector.shape_cast %21 : vector<1x4x10xf32> to vector<4x10xf32>
    %23 = vector.shape_cast %22 : vector<4x10xf32> to vector<4x10x1xf32>
    %24 = vector.extract_strided_slice %1 {offsets = [2, 0, 0], sizes = [1, 4, 10], strides = [1, 1, 1]} : vector<13x4x12xf32> to vector<1x4x10xf32>
    %25 = vector.shape_cast %24 : vector<1x4x10xf32> to vector<4x10xf32>
    %26 = vector.shape_cast %25 : vector<4x10xf32> to vector<4x10x1xf32>
    %27 = vector.extract_strided_slice %1 {offsets = [3, 0, 0], sizes = [1, 4, 10], strides = [1, 1, 1]} : vector<13x4x12xf32> to vector<1x4x10xf32>
    %28 = vector.shape_cast %27 : vector<1x4x10xf32> to vector<4x10xf32>
    %29 = vector.shape_cast %28 : vector<4x10xf32> to vector<4x10x1xf32>
    %30 = vector.extract_strided_slice %1 {offsets = [4, 0, 0], sizes = [1, 4, 10], strides = [1, 1, 1]} : vector<13x4x12xf32> to vector<1x4x10xf32>
    %31 = vector.shape_cast %30 : vector<1x4x10xf32> to vector<4x10xf32>
    %32 = vector.shape_cast %31 : vector<4x10xf32> to vector<4x10x1xf32>
    %33 = vector.broadcast %11 : vector<4x1x128xf32> to vector<4x10x128xf32>
    %34 = vector.broadcast %23 : vector<4x10x1xf32> to vector<4x10x128xf32>
    %35 = arith.subf %33, %34 : vector<4x10x128xf32>
    %36 = vector.broadcast %29 : vector<4x10x1xf32> to vector<4x10x128xf32>
    %37 = arith.mulf %35, %36 : vector<4x10x128xf32>
    %38 = vector.extract_strided_slice %20 {offsets = [0, 0, 0], sizes = [4, 10, 128], strides = [1, 1, 1]} : vector<4x11x128xf32> to vector<4x10x128xf32>
    %39 = arith.mulf %37, %38 : vector<4x10x128xf32>
    %40 = vector.broadcast %26 : vector<4x10x1xf32> to vector<4x10x128xf32>
    %41 = vector.broadcast %11 : vector<4x1x128xf32> to vector<4x10x128xf32>
    %42 = arith.subf %40, %41 : vector<4x10x128xf32>
    %43 = vector.broadcast %32 : vector<4x10x1xf32> to vector<4x10x128xf32>
    %44 = arith.mulf %42, %43 : vector<4x10x128xf32>
    %45 = vector.extract_strided_slice %20 {offsets = [0, 1, 0], sizes = [4, 10, 128], strides = [1, 1, 1]} : vector<4x11x128xf32> to vector<4x10x128xf32>
    %46 = arith.mulf %44, %45 : vector<4x10x128xf32>
    %47 = arith.addf %39, %46 : vector<4x10x128xf32>
    %48 = vector.extract_strided_slice %1 {offsets = [5, 0, 0], sizes = [1, 4, 9], strides = [1, 1, 1]} : vector<13x4x12xf32> to vector<1x4x9xf32>
    %49 = vector.shape_cast %48 : vector<1x4x9xf32> to vector<4x9xf32>
    %50 = vector.shape_cast %49 : vector<4x9xf32> to vector<4x9x1xf32>
    %51 = vector.extract_strided_slice %1 {offsets = [6, 0, 0], sizes = [1, 4, 9], strides = [1, 1, 1]} : vector<13x4x12xf32> to vector<1x4x9xf32>
    %52 = vector.shape_cast %51 : vector<1x4x9xf32> to vector<4x9xf32>
    %53 = vector.shape_cast %52 : vector<4x9xf32> to vector<4x9x1xf32>
    %54 = vector.extract_strided_slice %1 {offsets = [7, 0, 0], sizes = [1, 4, 9], strides = [1, 1, 1]} : vector<13x4x12xf32> to vector<1x4x9xf32>
    %55 = vector.shape_cast %54 : vector<1x4x9xf32> to vector<4x9xf32>
    %56 = vector.shape_cast %55 : vector<4x9xf32> to vector<4x9x1xf32>
    %57 = vector.extract_strided_slice %1 {offsets = [8, 0, 0], sizes = [1, 4, 9], strides = [1, 1, 1]} : vector<13x4x12xf32> to vector<1x4x9xf32>
    %58 = vector.shape_cast %57 : vector<1x4x9xf32> to vector<4x9xf32>
    %59 = vector.shape_cast %58 : vector<4x9xf32> to vector<4x9x1xf32>
    %60 = vector.broadcast %11 : vector<4x1x128xf32> to vector<4x9x128xf32>
    %61 = vector.broadcast %50 : vector<4x9x1xf32> to vector<4x9x128xf32>
    %62 = arith.subf %60, %61 : vector<4x9x128xf32>
    %63 = vector.broadcast %56 : vector<4x9x1xf32> to vector<4x9x128xf32>
    %64 = arith.mulf %62, %63 : vector<4x9x128xf32>
    %65 = vector.extract_strided_slice %47 {offsets = [0, 0, 0], sizes = [4, 9, 128], strides = [1, 1, 1]} : vector<4x10x128xf32> to vector<4x9x128xf32>
    %66 = arith.mulf %64, %65 : vector<4x9x128xf32>
    %67 = vector.broadcast %53 : vector<4x9x1xf32> to vector<4x9x128xf32>
    %68 = vector.broadcast %11 : vector<4x1x128xf32> to vector<4x9x128xf32>
    %69 = arith.subf %67, %68 : vector<4x9x128xf32>
    %70 = vector.broadcast %59 : vector<4x9x1xf32> to vector<4x9x128xf32>
    %71 = arith.mulf %69, %70 : vector<4x9x128xf32>
    %72 = vector.extract_strided_slice %47 {offsets = [0, 1, 0], sizes = [4, 9, 128], strides = [1, 1, 1]} : vector<4x10x128xf32> to vector<4x9x128xf32>
    %73 = arith.mulf %71, %72 : vector<4x9x128xf32>
    %74 = arith.addf %66, %73 : vector<4x9x128xf32>
    %75 = vector.extract_strided_slice %1 {offsets = [9, 0, 0], sizes = [1, 4, 8], strides = [1, 1, 1]} : vector<13x4x12xf32> to vector<1x4x8xf32>
    %76 = vector.shape_cast %75 : vector<1x4x8xf32> to vector<4x8xf32>
    %77 = vector.shape_cast %76 : vector<4x8xf32> to vector<4x8x1xf32>
    %78 = vector.extract_strided_slice %1 {offsets = [10, 0, 0], sizes = [1, 4, 8], strides = [1, 1, 1]} : vector<13x4x12xf32> to vector<1x4x8xf32>
    %79 = vector.shape_cast %78 : vector<1x4x8xf32> to vector<4x8xf32>
    %80 = vector.shape_cast %79 : vector<4x8xf32> to vector<4x8x1xf32>
    %81 = vector.extract_strided_slice %1 {offsets = [11, 0, 0], sizes = [1, 4, 8], strides = [1, 1, 1]} : vector<13x4x12xf32> to vector<1x4x8xf32>
    %82 = vector.shape_cast %81 : vector<1x4x8xf32> to vector<4x8xf32>
    %83 = vector.shape_cast %82 : vector<4x8xf32> to vector<4x8x1xf32>
    %84 = vector.extract_strided_slice %1 {offsets = [12, 0, 0], sizes = [1, 4, 8], strides = [1, 1, 1]} : vector<13x4x12xf32> to vector<1x4x8xf32>
    %85 = vector.shape_cast %84 : vector<1x4x8xf32> to vector<4x8xf32>
    %86 = vector.shape_cast %85 : vector<4x8xf32> to vector<4x8x1xf32>
    %87 = vector.broadcast %11 : vector<4x1x128xf32> to vector<4x8x128xf32>
    %88 = vector.broadcast %77 : vector<4x8x1xf32> to vector<4x8x128xf32>
    %89 = arith.subf %87, %88 : vector<4x8x128xf32>
    %90 = vector.broadcast %83 : vector<4x8x1xf32> to vector<4x8x128xf32>
    %91 = arith.mulf %89, %90 : vector<4x8x128xf32>
    %92 = vector.extract_strided_slice %74 {offsets = [0, 0, 0], sizes = [4, 8, 128], strides = [1, 1, 1]} : vector<4x9x128xf32> to vector<4x8x128xf32>
    %93 = arith.mulf %91, %92 : vector<4x8x128xf32>
    %94 = vector.broadcast %80 : vector<4x8x1xf32> to vector<4x8x128xf32>
    %95 = vector.broadcast %11 : vector<4x1x128xf32> to vector<4x8x128xf32>
    %96 = arith.subf %94, %95 : vector<4x8x128xf32>
    %97 = vector.broadcast %86 : vector<4x8x1xf32> to vector<4x8x128xf32>
    %98 = arith.mulf %96, %97 : vector<4x8x128xf32>
    %99 = vector.extract_strided_slice %74 {offsets = [0, 1, 0], sizes = [4, 8, 128], strides = [1, 1, 1]} : vector<4x9x128xf32> to vector<4x8x128xf32>
    %100 = arith.mulf %98, %99 : vector<4x8x128xf32>
    %101 = arith.addf %93, %100 : vector<4x8x128xf32>
    %102 = vector.shape_cast %101 : vector<4x8x128xf32> to vector<32x128xf32>
    %cst_6 = arith.constant 0.000000e+00 : f32
    %103 = vector.broadcast %cst_6 : f32 to vector<4x128xf32>
    %104 = tpu.concatenate %10, %103 in 0 : vector<4x128xf32>, vector<4x128xf32> -> vector<8x128xf32>
    %105 = tpu.concatenate %104, %102 in 0 : vector<8x128xf32>, vector<32x128xf32> -> vector<40x128xf32>
    %cst_7 = arith.constant dense<0.000000e+00> : vector<8x128xf32>
    %106 = tpu.matmul %2, %105, %cst_7 {dimension_numbers = #tpu.dot_dimension_numbers<[1], [0], [0], [1], [0, 0, 1, 1], [], []>} : vector<8x40xf32>, vector<40x128xf32>, vector<8x128xf32> -> vector<8x128xf32>
    %c0_8 = arith.constant 0 : index
    %c0_9 = arith.constant 0 : index
    %107 = vector.load %arg4[%c0_8, %c0_9] : memref<8x128xf32, #tpu.memory_space<vmem>>, vector<8x128xf32>
    tpu.vector_store %arg4[%c0_8, %c0_9], %106 {strides = array<i32>} : memref<8x128xf32, #tpu.memory_space<vmem>>, vector<8x128xf32>,
    return
  }
  func.func @transform_0(%arg0: i32) -> (i32, i32) {
    %c0_i32 = arith.constant 0 : i32
    %c0_i32_0 = arith.constant 0 : i32
    return %c0_i32, %arg0 : i32, i32
  }
  func.func @transform_1(%arg0: i32) -> (i32, i32, i32) {
    %c0_i32 = arith.constant 0 : i32
    %c0_i32_0 = arith.constant 0 : i32
    %c0_i32_1 = arith.constant 0 : i32
    %c0_i32_2 = arith.constant 0 : i32
    return %c0_i32, %c0_i32_0, %c0_i32_1 : i32, i32, i32
  }
  func.func @transform_2(%arg0: i32) -> (i32, i32) {
    %c0_i32 = arith.constant 0 : i32
    %c0_i32_0 = arith.constant 0 : i32
    %c0_i32_1 = arith.constant 0 : i32
    return %c0_i32, %c0_i32_0 : i32, i32
  }
  func.func @transform_3(%arg0: i32) -> (i32, i32) {
    %c0_i32 = arith.constant 0 : i32
    %c0_i32_0 = arith.constant 0 : i32
    return %c0_i32, %arg0 : i32, i32
  }
}

</mosaic_0001>

<bundles_post_ra>
// kernel: tpu_custom_call.1
= control target key start
LH: loop header
LB: loop body
LE: loop exit
PB: predicated region body
PF: predicated region fallthrough
CT: control target
= control target key end

     0   :  { %8 = vsyncpa [#allocation3], 0  ;;  %s1861_s0 = inlined_call_operand.vmem [shape: f32[4,512], index: 0, kind: input, shape index: {}]   ;;  %s1862_s1 = inlined_call_operand.vmem [shape: f32[13,4,12], index: 1, kind: input, shape index: {}]   ;;  %s1863_s2 = inlined_call_operand.vmem [shape: f32[8,40], index: 2, kind: input, shape index: {}]   ;;  %s1864_s3 = inlined_call_operand.hbm [shape: f32[8,512], index: 3, kind: output, shape index: {}]  }
   0x1   :  { %10 = vsyncpa [#allocation3 + $0x1], 0  ;;  %s1357_s12 = smov 0   ;;  %s1359_s13 = smov 0  }
   0x2   :  { %s1361_s14 = smov 0   ;;  %s1363_s15 = smov 0  }
   0x3 LB: > { %s1378_s16 = sadd.s32 4294967295, %s1329_s15   ;;  %s1172_s17 = sadd.s32 4294967294, %s1329_s15   ;;  %s1329_s15 = sphi %s1363_s15, %s1870_s15   ;;  %s1325_s14 = sphi %s1361_s14, %s1869_s14   ;;  %s1321_s13 = sphi %s1359_s13, %s1868_s13   ;;  %s1317_s12 = sphi %s1357_s12, %s1867_s12  }
   0x4   : > { %s1382_s18 = sadd.s32 1, %s1329_s15   ;;  %s91_s19 = sadd.s32 1, %s1325_s14 }
   0x5   : > { %s88_s20 = ssub.s32 %s1329_s15, %s1382_s18  ;;  %p101_p0 = scmp.ne.s32.totalorder %s1325_s14, %s1321_s13 }
   0x6   : > { %p89_p1 = scmp.eq.s32.totalorder %s88_s20, 0  ;;  %p102_p2 = scmp.eq.s32.totalorder %s1378_s16, 3 }
   0x7   : > { %p107_p3 = scmp.ne.s32.totalorder %s1321_s13, %s1317_s12  ;;  %p108_p4 = scmp.eq.s32.totalorder %s1172_s17, 3 }
   0x8   : > { %s1393_s21 = scalar_select %p89_p1, %s1325_s14, %s91_s19  }
   0x9   : > { %p1395_p5 = por %p102_p2, %p101_p0  ;;  %p1399_p6 = por %p108_p4, %p107_p3 }
   0xa   : > { %p1175_p7 = scmp.ge.s32.totalorder %s1329_s15, 1  ;;  %p139_p8 = scmp.lt.s32.totalorder %s1329_s15, 5 }
   0xc   : > { %p140_p9 = pnand %p1175_p7, %p139_p8 }
   0xd   : > { %v192_v0 = vlaneseq (!%p140_p9)  ;;  %v167_v2 = vld [vmem:[%s1862_s1] sm:$0xf] (!%p140_p9)  ;;  %p162_p10 = scmp.lt.s32.totalorder (!%p140_p9), %s1378_s16, 3  ;;  %v1331_v5 = vmov (!%p140_p9), 1966171168   ;;  %vm309_vm4 = vcmask (!%p140_p9), 1046528  }
   0xe   : > { %143 = sbr.rel (%p140_p9) target bundleno = 541 (0x21d), region = 32  ;;  %v190_v6 = vunpack.c.l.s4 (!%p140_p9), %v1331_v5  ;;  %v170_v11 = vld [vmem:[%s1862_s1 + $0xc] sm:$0xf] (!%p140_p9)  ;;  %v1430_v14 = vld [vmem:[%s1862_s1 + $0x10] sm:$0xf] (!%p140_p9)  ;;  %vm1334_vm9 = vmmov (!%p140_p9), 0  }
   0xf   : > { %v193_v1 = vshrl.u32 (!%p140_p9), %v192_v0, 7  ;;  %v1437_v16 = vld [vmem:[%s1862_s1 + $0x4] sm:$0xf] (!%p140_p9)  ;;  %v1449_v20 = vld [vmem:[%s1862_s1 + $0x14] sm:$0xf] (!%p140_p9)  ;;  %vm1022_vm10 = vcmask (!%p140_p9), 1043456  }
  0x10   : > { %v191_v10 = vunpack.c.0.s8 (!%p140_p9), %v190_v6  ;;  %v1461_v24 = vld [vmem:[%s1862_s1 + $0x8] sm:$0xf] (!%p140_p9)  ;;  %v1466_v27 = vld [vmem:[%s1862_s1 + $0x18] sm:$0xf] (!%p140_p9)  ;;  %v1492_v39 = vld [vmem:[%s1862_s1 + $0x1c] sm:$0xf] (!%p140_p9) }
  0x11   : > { %v1409_v3 = vsub.s32 (!%p140_p9), 0, %v193_v1  ;;  %v1411_v4 = vsub.s32 (!%p140_p9), 1, %v193_v1  ;;  %v1416_v9 = vsub.s32 (!%p140_p9), 2, %v193_v1  ;;  %v1424_v12 = vsub.s32 (!%p140_p9), 3, %v193_v1  ;;  %v1502_v42 = vld [vmem:[%s1862_s1 + $0x20] sm:$0xf] (!%p140_p9) }
  0x12   : > { %v194_v19 = vsub.s32 (!%p140_p9), %v191_v10, %v193_v1  ;;  %vm1335_vm11 = vmmov (!%p140_p9), 1   ;;  %vm1024_vm13 = vcmask (!%p140_p9), 326656   ;;  %s159_s17 = sand.u32 (!%p140_p9), 1, %s1321_s13   ;;  %s1190_s25 = sshll.u32 (!%p140_p9), %s1378_s16, 7 }
  0x13   : > { %v227_v7 = vrot.slane (!%p140_p9), %v167_v2, %v1411_v4  ;;  %v216_v8 = vrot.slane (!%p140_p9), %v167_v2, %v1409_v3  ;;  %v238_v13 = vrot.slane (!%p140_p9), %v167_v2, %v1416_v9  ;;  %v1440_v17 = vrot.slane (!%p140_p9), %v170_v11, %v1424_v12  ;;  %vm1214_vm12 = vmpackc.low (!%p140_p9), %vm1335_vm11, %vm1022_vm10  ;;  %s1176_s19 = sshll.u32 (!%p140_p9), %s159_s17, 3  ;;  %s1821_s28 = scalar_lea.hbm (!%p140_p9), %s1864_s3, %s1190_s25 }
  0x14   : > { %v1444_v18 = vrot.slane (!%p140_p9), %v1430_v14, %v1424_v12  ;;  %v341_v22 = vrot.slane (!%p140_p9), %v1437_v16, %v1409_v3  ;;  %v1456_v23 = vrot.slane (!%p140_p9), %v1449_v20, %v1424_v12  ;;  %v385_v31 = vrot.slane (!%p140_p9), %v1461_v24, %v1409_v3  ;;  %s161_s20 = scalar_lea.vmem (!%p140_p9), [#allocation2], %s1176_s19  ;;  %s1100_s29 = scalar_lea.sflag (!%p140_p9), [#allocation3], %s159_s17 }
  0x15   : > { %s163_s26 = scalar_select %p162_p10, %s1378_s16, 3  ;;  %229 = vbcast.lane.b32.xlu1 %v227_v7, 256  ;;  %218 = vbcast.lane.b32.xlu0 %v216_v8, 256  ;;  %v1475_v32 = vrot.slane %v1466_v27, %v1424_v12  ;;  %v429_v37 = vrot.slane %v170_v11, %v1409_v3  ;;  %v473_v38 = vrot.slane %v1430_v14, %v1409_v3 }
  0x16   : > { %v1496_v40 = vrot.slane %v1492_v39, %v1424_v12  ;;  %v249_v41 = vrot.slane %v167_v2, %v1424_v12  ;;  %v1506_v43 = vrot.slane %v1502_v42, %v1424_v12  ;;  %v352_v44 = vrot.slane %v1437_v16, %v1411_v4  ;;  %s1113_s24 = sshll.u32 %s161_s20, 4  ;;  %s1336_s16 = smov [#allocation2]   ;;  %s1816_s24 = int_to_ptr.vmem [resolvable:$true] %s1113_s24 }
  0x17   : > { %s1177_s27 = sshll.u32 %s163_s26, 2  ;;  %v363_v45 = vrot.slane %v1437_v16, %v1416_v9  ;;  %v396_v46 = vrot.slane %v1461_v24, %v1411_v4  ;;  %v407_v47 = vrot.slane %v1461_v24, %v1416_v9  ;;  %v440_v48 = vrot.slane %v170_v11, %v1411_v4  ;;  %s1271_s4 = sshll.u32 %s1336_s16, 4  ;;  %s1272_s4 = int_to_ptr.vmem [resolvable:$false] %s1271_s4 }
  0x18   : > { %s165_s30 = scalar_lea.vmem %s1861_s0, %s1177_s27  ;;  %v451_v49 = vrot.slane %v170_v11, %v1416_v9  ;;  %v484_v50 = vrot.slane %v1430_v14, %v1411_v4  ;;  %v495_v51 = vrot.slane %v1430_v14, %v1416_v9  ;;  %v601_v52 = vrot.slane %v1449_v20, %v1409_v3  ;;  %v1561_v11 = vld [vmem:[%s1862_s1 + $0x28] sm:$0xf]  ;;  %s1273_s5 = scalar_lea.vmem %s1272_s4, 256 }
  0x19   : > { %233 = vbcast.lane.b32.xlu1 %v227_v7, 264  ;;  %222 = vbcast.lane.b32.xlu0 %v216_v8, 264  ;;  %v1432_v15 = vld [vmem:[%s165_s30] sm:$0xf]  ;;  %v645_v53 = vrot.slane %v1466_v27, %v1409_v3  ;;  %v689_v54 = vrot.slane %v1492_v39, %v1409_v3  ;;  %v733_v55 = vrot.slane %v1502_v42, %v1409_v3  ;;  %v1332_v7 = vmov 0.0   ;;  %s1267_s30 = scalar_lea.vmem %s1816_s24, 128  ;;  %p1274_p0 = scmp.lt.s32.totalorder %s1816_s24, %s1272_s4 }
  0x1a   : > { %v195_v21 = vrot.slane %v1432_v15, %v194_v19  ;;  %v374_v56 = vrot.slane %v1437_v16, %v1424_v12  ;;  %v418_v57 = vrot.slane %v1461_v24, %v1424_v12  ;;  %v612_v58 = vrot.slane %v1449_v20, %v1411_v4  ;;  %1209 = vmatprep.mubr.msk.f32.mxu0 %vm1334_vm9, %v1332_v7  ;;  %p1268_p11 = scmp.ne.s32.totalorder %s1816_s24, %s1267_s30  ;;  %p1275_p1 = scmp.lt.s32.totalorder %s1273_s5, %s1267_s30 }
  0x1b   : > { %v623_v59 = vrot.slane %v1449_v20, %v1416_v9  ;;  %v656_v60 = vrot.slane %v1466_v27, %v1411_v4  ;;  %v667_v61 = vrot.slane %v1466_v27, %v1416_v9  ;;  %v700_v62 = vrot.slane %v1492_v39, %v1411_v4  ;;  %v1579_v27 = vld [vmem:[%s1862_s1 + $0x30] sm:$0xf] }
  0x1c   : > { %v196_v25 = vcombine.high %v195_v21, %v195_v21  ;;  %v203_v26 = vrot.slane %v195_v21, %v194_v19  ;;  %v711_v63 = vrot.slane %v1492_v39, %v1416_v9  ;;  %v744_v2 = vrot.slane %v1502_v42, %v1411_v4  ;;  %p1269_p12 = pnand %p1268_p11, %p1395_p5  ;;  %p1276_p2 = por %p1275_p1, %p1274_p0 }
  0x1d   : > { %244 = vbcast.lane.b32.xlu1 %v238_v13, 264  ;;  %240 = vbcast.lane.b32.xlu0 %v238_v13, 256  ;;  %v1566_v13 = vld [vmem:[%s1862_s1 + $0x24] sm:$0xf] }
  0x1e   : > { %v210_v28 = vrot.slane %v196_v25, %v194_v19  ;;  %v1469_v29 = vrot.slane %v203_v26, %v1409_v3  ;;  %v211_v30 = vcombine.high %v203_v26, %v203_v26  ;;  %v889_v25 = vrot.slane %v1561_v11, %v1409_v3  ;;  %p1270_p13 = pneg %p1269_p12 }
  0x1f   : > { %v861_v26 = vrot.slane %v1566_v13, %v1409_v3 }
  0x20   : > { %v1478_v33 = vrot.slane %v210_v28, %v1409_v3  ;;  %v1481_v34 = vrot.slane %v211_v30, %v1409_v3  ;;  %v212_v35 = vcombine.high %v210_v28, %v210_v28  ;;  %p1277_p3 = pnand %p1276_p2, %p1270_p13 }
  0x21   : > { %347 = vbcast.lane.b32.xlu1 %v341_v22, 264  ;;  %343 = vbcast.lane.b32.xlu0 %v341_v22, 256 }
  0x22   : > { %v1484_v36 = vrot.slane %v212_v35, %v1409_v3 }
  0x25   : > { %391 = vbcast.lane.b32.xlu1 %v385_v31, 264  ;;  %387 = vbcast.lane.b32.xlu0 %v385_v31, 256 }
  0x29   : > { %435 = vbcast.lane.b32.xlu1 %v429_v37, 264  ;;  %431 = vbcast.lane.b32.xlu0 %v429_v37, 256 }
  0x2d   : > { %479 = vbcast.lane.b32.xlu1 %v473_v38, 264  ;;  %475 = vbcast.lane.b32.xlu0 %v473_v38, 256 }
  0x31   : > { %255 = vbcast.lane.b32.xlu1 %v249_v41, 264  ;;  %251 = vbcast.lane.b32.xlu0 %v249_v41, 256 }
  0x35   : > { %358 = vbcast.lane.b32.xlu1 %v352_v44, 264  ;;  %354 = vbcast.lane.b32.xlu0 %v352_v44, 256  ;;  %v1594_v44 = vld [vmem:[%s1862_s1 + $0x2c] sm:$0xf] }
  0x39   : > { %369 = vbcast.lane.b32.xlu1 %v363_v45, 264  ;;  %365 = vbcast.lane.b32.xlu0 %v363_v45, 256 }
  0x3d   : > { %402 = vbcast.lane.b32.xlu1 %v396_v46, 264  ;;  %398 = vbcast.lane.b32.xlu0 %v396_v46, 256 }
  0x41   : > { %413 = vbcast.lane.b32.xlu1 %v407_v47, 264  ;;  %409 = vbcast.lane.b32.xlu0 %v407_v47, 256 }
  0x45   : > { %446 = vbcast.lane.b32.xlu1 %v440_v48, 264  ;;  %442 = vbcast.lane.b32.xlu0 %v440_v48, 256 }
  0x49   : > { %457 = vbcast.lane.b32.xlu1 %v451_v49, 264  ;;  %453 = vbcast.lane.b32.xlu0 %v451_v49, 256 }
  0x4d   : > { %490 = vbcast.lane.b32.xlu1 %v484_v50, 264  ;;  %486 = vbcast.lane.b32.xlu0 %v484_v50, 256 }
  0x51   : > { %501 = vbcast.lane.b32.xlu1 %v495_v51, 264  ;;  %497 = vbcast.lane.b32.xlu0 %v495_v51, 256 }
  0x55   : > { %607 = vbcast.lane.b32.xlu1 %v601_v52, 264  ;;  %603 = vbcast.lane.b32.xlu0 %v601_v52, 256 }
  0x59   : > { %651 = vbcast.lane.b32.xlu1 %v645_v53, 264  ;;  %647 = vbcast.lane.b32.xlu0 %v645_v53, 256 }
  0x5d   : > { %695 = vbcast.lane.b32.xlu1 %v689_v54, 264  ;;  %691 = vbcast.lane.b32.xlu0 %v689_v54, 256 }
  0x61   : > { %739 = vbcast.lane.b32.xlu1 %v733_v55, 264  ;;  %735 = vbcast.lane.b32.xlu0 %v733_v55, 256  ;;  %v1333_v55 = vmov 0.0|0.0  }
  0x62   : > { %1212 = vmatprep.subr.bf16.mxu0 %v1333_v55 }
  0x65   : > { %380 = vbcast.lane.b32.xlu1 %v374_v56, 264  ;;  %376 = vbcast.lane.b32.xlu0 %v374_v56, 256 }
  0x69   : > { %424 = vbcast.lane.b32.xlu1 %v418_v57, 264  ;;  %420 = vbcast.lane.b32.xlu0 %v418_v57, 256  ;;  %v917_v57 = vrot.slane %v1594_v44, %v1409_v3 }
  0x6d   : > { %618 = vbcast.lane.b32.xlu1 %v612_v58, 264  ;;  %614 = vbcast.lane.b32.xlu0 %v612_v58, 256 }
  0x71   : > { %629 = vbcast.lane.b32.xlu1 %v623_v59, 264  ;;  %625 = vbcast.lane.b32.xlu0 %v623_v59, 256 }
  0x75   : > { %662 = vbcast.lane.b32.xlu1 %v656_v60, 264  ;;  %658 = vbcast.lane.b32.xlu0 %v656_v60, 256 }
  0x79   : > { %673 = vbcast.lane.b32.xlu1 %v667_v61, 264  ;;  %669 = vbcast.lane.b32.xlu0 %v667_v61, 256 }
  0x7d   : > { %468 = vbcast.lane.b32.xlu1 %v1440_v17, 264  ;;  %464 = vbcast.lane.b32.xlu0 %v1440_v17, 256  ;;  %v755_v17 = vrot.slane %v1502_v42, %v1416_v9  ;;  %v945_v42 = vrot.slane %v1579_v27, %v1409_v3 }
  0x81   : > { %512 = vbcast.lane.b32.xlu1 %v1444_v18, 264  ;;  %508 = vbcast.lane.b32.xlu0 %v1444_v18, 256 }
  0x85   : > { %706 = vbcast.lane.b32.xlu1 %v700_v62, 264  ;;  %702 = vbcast.lane.b32.xlu0 %v700_v62, 256 }
  0x87   : > { %v230_v0 = vpop.permute.xlu1 %229  ;;  %v219_v1 = vpop.permute.xlu0 %218 }
  0x88   : > { %vm279_vm0 = vcmp.ge.f32.partialorder %v1478_v33, %v230_v0  ;;  %vm277_vm1 = vcmp.ge.f32.partialorder %v1469_v29, %v219_v1 }
  0x89   : > { %717 = vbcast.lane.b32.xlu1 %v711_v63, 264  ;;  %713 = vbcast.lane.b32.xlu0 %v711_v63, 256  ;;  %v1181_v8 = vsel %vm279_vm0, 1.0, %v1332_v7  ;;  %v1179_v10 = vsel %vm277_vm1, 1.0, %v1332_v7 }
  0x8a   : > { %v313_v20 = vrot.slane %v1181_v8, 1  ;;  %v310_v21 = vrot.slane %v1179_v10, 1 }
  0x8b   : > { %v234_v5 = vpop.permute.xlu1 %233  ;;  %v223_v6 = vpop.permute.xlu0 %222 }
  0x8c   : > { %vm280_vm2 = vcmp.ge.f32.partialorder %v1478_v33, %v234_v5  ;;  %vm278_vm3 = vcmp.ge.f32.partialorder %v1469_v29, %v223_v6 }
  0x8d   : > { %v1182_v14 = vsel %vm280_vm2, 1.0, %v1332_v7  ;;  %v1180_v16 = vsel %vm278_vm3, 1.0, %v1332_v7  ;;  %750 = vbcast.lane.b32.xlu1 %v744_v2, 264  ;;  %746 = vbcast.lane.b32.xlu0 %v744_v2, 256 }
  0x8e   : > { %v314_v18 = vrot.slane %v1182_v14, 1  ;;  %v311_v19 = vrot.slane %v1180_v16, 1 }
  0x8f   : > { %v245_v22 = vpop.permute.xlu1 %244  ;;  %v241_v24 = vpop.permute.xlu0 %240 }
  0x90   : > { %v1581_v28 = vsub.f32 %v1182_v14, %v314_v18  ;;  %v331_v30 = vsub.f32 %v1180_v16, %v311_v19  ;;  %vm282_vm5 = vcmp.ge.f32.partialorder %v1481_v34, %v245_v22  ;;  %vm281_vm6 = vcmp.ge.f32.partialorder %v1481_v34, %v241_v24 }
  0x91   : > { %v1184_v31 = vsel %vm282_vm5, 1.0, %v1332_v7  ;;  %v1183_v35 = vsel %vm281_vm6, 1.0, %v1332_v7  ;;  %761 = vbcast.lane.b32.xlu1 %v755_v17, 264  ;;  %757 = vbcast.lane.b32.xlu0 %v755_v17, 256  ;;  %v312_v37 = vsel %vm309_vm4, %v310_v21, %v311_v19  ;;  %v315_v38 = vsel %vm309_vm4, %v313_v20, %v314_v18 }
  0x92   : > { %v317_v39 = vrot.slane %v1184_v31, 1  ;;  %v316_v41 = vrot.slane %v1183_v35, 1  ;;  %v330_v45 = vsub.f32 %v1179_v10, %v312_v37  ;;  %v563_v48 = vrot.slane %v331_v30, 1 }
  0x93   : > { %v348_v46 = vpop.permute.xlu1 %347  ;;  %v344_v47 = vpop.permute.xlu0 %343  ;;  %v1596_v49 = vsub.f32 %v1181_v8, %v315_v38  ;;  %v566_v50 = vrot.slane %v1581_v28, 1  ;;  %v875_v22 = vrot.slane %v1566_v13, %v1416_v9  ;;  %v868_v24 = vrot.slane %v1566_v13, %v1411_v4 }
  0x94   : > { %v1599_v51 = vsub.f32 %v1184_v31, %v317_v39  ;;  %v318_v52 = vsel %vm309_vm4, %v316_v41, %v317_v39  ;;  %v515_v53 = vsub.f32 %v1469_v29, %v348_v46  ;;  %v514_v54 = vsub.f32 %v1469_v29, %v344_v47 }
  0x95   : > { %v1605_v56 = vsub.f32 %v1183_v35, %v318_v52  ;;  %891 = vbcast.lane.b32.xlu1 %v889_v25, 256  ;;  %863 = vbcast.lane.b32.xlu0 %v861_v26, 256  ;;  %v562_v58 = vrot.slane %v330_v45, 1  ;;  %v565_v59 = vrot.slane %v1596_v49, 1  ;;  %v903_v38 = vrot.slane %v1561_v11, %v1416_v9 }
  0x96   : > { %v569_v60 = vrot.slane %v1599_v51, 1  ;;  %v896_v39 = vrot.slane %v1561_v11, %v1411_v4 }
  0x97   : > { %v568_v61 = vrot.slane %v1605_v56, 1  ;;  %v392_v62 = vpop.permute.xlu1 %391  ;;  %v388_v63 = vpop.permute.xlu0 %387  ;;  %v564_v0 = vsel %vm309_vm4, %v562_v58, %v563_v48  ;;  %v1616_v1 = vsel %vm309_vm4, %v565_v59, %v566_v50 }
  0x98   : > { %v539_v2 = vsub.f32 %v392_v62, %v1469_v29  ;;  %v538_v3 = vsub.f32 %v388_v63, %v1469_v29 }
  0x99   : > { %947 = vbcast.lane.b32.xlu1 %v945_v42, 256  ;;  %919 = vbcast.lane.b32.xlu0 %v917_v57, 256  ;;  %v1623_v5 = vsel %vm309_vm4, %v568_v61, %v569_v60 }
  0x9b   : > { %v436_v6 = vpop.permute.xlu1 %435  ;;  %v432_v8 = vpop.permute.xlu0 %431 }
  0x9c   : > { %v523_v10 = vmul.f32 %v515_v53, %v436_v6  ;;  %v522_v14 = vmul.f32 %v514_v54, %v432_v8 }
  0x9d   : > { %640 = vbcast.lane.b32.xlu1 %v1456_v23, 264  ;;  %636 = vbcast.lane.b32.xlu0 %v1456_v23, 256 }
  0x9e   : > { %v531_v16 = vmul.f32 %v523_v10, %v331_v30  ;;  %v530_v17 = vmul.f32 %v522_v14, %v330_v45 }
  0x9f   : > { %v480_v18 = vpop.permute.xlu1 %479  ;;  %v476_v19 = vpop.permute.xlu0 %475 }
  0xa0   : > { %v547_v20 = vmul.f32 %v539_v2, %v480_v18  ;;  %v546_v21 = vmul.f32 %v538_v3, %v476_v19 }
  0xa1   : > { %684 = vbcast.lane.b32.xlu1 %v1475_v32, 264  ;;  %680 = vbcast.lane.b32.xlu0 %v1475_v32, 256 }
  0xa2   : > { %v583_v25 = vmul.f32 %v563_v48, %v547_v20  ;;  %v582_v26 = vmul.f32 %v564_v0, %v546_v21 }
  0xa3   : > { %v256_v31 = vpop.permute.xlu1 %255  ;;  %v252_v23 = vpop.permute.xlu0 %251 }
  0xa4   : > { %vm284_vm7 = vcmp.ge.f32.partialorder %v1484_v36, %v256_v31  ;;  %vm283_vm8 = vcmp.ge.f32.partialorder %v1484_v36, %v252_v23  ;;  %v1635_v30 = vadd.f32 %v583_v25, %v531_v16  ;;  %v1637_v35 = vadd.f32 %v582_v26, %v530_v17 }
  0xa5   : > { %v1186_v32 = vsel %vm284_vm7, 1.0, %v1332_v7  ;;  %v1185_v37 = vsel %vm283_vm8, 1.0, %v1332_v7  ;;  %877 = vbcast.lane.b32.xlu1 %v875_v22, 256  ;;  %870 = vbcast.lane.b32.xlu0 %v868_v24, 256  ;;  %v931_v17 = vrot.slane %v1594_v44, %v1416_v9  ;;  %v959_v22 = vrot.slane %v1579_v27, %v1416_v9 }
  0xa6   : > { %v320_v41 = vrot.slane %v1186_v32, 1  ;;  %v319_v42 = vrot.slane %v1185_v37, 1  ;;  %v822_v45 = vrot.slane %v1637_v35, 1  ;;  %v823_v46 = vrot.slane %v1635_v30, 1 }
  0xa7   : > { %v359_v47 = vpop.permute.xlu1 %358  ;;  %v355_v48 = vpop.permute.xlu0 %354  ;;  %v910_v23 = vrot.slane %v1561_v11, %v1424_v12  ;;  %v938_v11 = vrot.slane %v1594_v44, %v1424_v12 }
  0xa8   : > { %v1647_v52 = vsub.f32 %v1186_v32, %v320_v41  ;;  %v321_v53 = vsel %vm309_vm4, %v319_v42, %v320_v41  ;;  %v517_v54 = vsub.f32 %v1478_v33, %v359_v47  ;;  %v516_v57 = vsub.f32 %v1478_v33, %v355_v48 }
  0xa9   : > { %v1652_v58 = vsub.f32 %v1185_v37, %v321_v53  ;;  %905 = vbcast.lane.b32.xlu1 %v903_v38, 256  ;;  %898 = vbcast.lane.b32.xlu0 %v896_v39, 256  ;;  %v1657_v59 = vsel %vm309_vm4, %v822_v45, %v823_v46  ;;  %v882_v32 = vrot.slane %v1566_v13, %v1424_v12 }
  0xaa   : > { %v572_v61 = vrot.slane %v1647_v52, 1  ;;  %v966_v42 = vrot.slane %v1579_v27, %v1424_v12 }
  0xab   : > { %v571_v62 = vrot.slane %v1652_v58, 1  ;;  %v370_v63 = vpop.permute.xlu1 %369  ;;  %v366_v0 = vpop.permute.xlu0 %365 }
  0xac   : > { %v519_v2 = vsub.f32 %v1481_v34, %v370_v63  ;;  %v518_v3 = vsub.f32 %v1481_v34, %v366_v0 }
  0xad   : > { %728 = vbcast.lane.b32.xlu1 %v1496_v40, 264  ;;  %724 = vbcast.lane.b32.xlu0 %v1496_v40, 256  ;;  %v1668_v6 = vsel %vm309_vm4, %v571_v62, %v572_v61  ;;  %v924_v40 = vrot.slane %v1594_v44, %v1411_v4 }
  0xaf   : > { %v403_v8 = vpop.permute.xlu1 %402  ;;  %v399_v10 = vpop.permute.xlu0 %398 }
  0xb0   : > { %v541_v14 = vsub.f32 %v403_v8, %v1478_v33  ;;  %v540_v16 = vsub.f32 %v399_v10, %v1478_v33 }
  0xb1   : > { %772 = vbcast.lane.b32.xlu1 %v1506_v43, 264  ;;  %768 = vbcast.lane.b32.xlu0 %v1506_v43, 256  ;;  %v952_v43 = vrot.slane %v1579_v27, %v1411_v4 }
  0xb3   : > { %v414_v18 = vpop.permute.xlu1 %413  ;;  %v410_v19 = vpop.permute.xlu0 %409 }
  0xb4   : > { %v543_v20 = vsub.f32 %v414_v18, %v1481_v34  ;;  %v542_v21 = vsub.f32 %v410_v19, %v1481_v34 }
  0xb5   : > { %933 = vbcast.lane.b32.xlu1 %v931_v17, 256  ;;  %926 = vbcast.lane.b32.xlu0 %v924_v40, 256 }
  0xb7   : > { %v447_v24 = vpop.permute.xlu1 %446  ;;  %v443_v25 = vpop.permute.xlu0 %442 }
  0xb8   : > { %v525_v26 = vmul.f32 %v517_v54, %v447_v24  ;;  %v524_v31 = vmul.f32 %v516_v57, %v443_v25 }
  0xb9   : > { %961 = vbcast.lane.b32.xlu1 %v959_v22, 256  ;;  %954 = vbcast.lane.b32.xlu0 %v952_v43, 256 }
  0xba   : > { %v533_v37 = vmul.f32 %v525_v26, %v1581_v28  ;;  %v532_v38 = vmul.f32 %v524_v31, %v1596_v49 }
  0xbb   : > { %v458_v9 = vpop.permute.xlu1 %457  ;;  %v454_v39 = vpop.permute.xlu0 %453 }
  0xbc   : > { %v527_v4 = vmul.f32 %v519_v2, %v458_v9  ;;  %v526_v41 = vmul.f32 %v518_v3, %v454_v39 }
  0xbd   : > { %912 = vbcast.lane.b32.xlu1 %v910_v23, 256  ;;  %884 = vbcast.lane.b32.xlu0 %v882_v32, 256 }
  0xbe   : > { %v535_v13 = vmul.f32 %v527_v4, %v1599_v51  ;;  %v534_v45 = vmul.f32 %v526_v41, %v1605_v56 }
  0xbf   : > { %v491_v49 = vpop.permute.xlu1 %490  ;;  %v487_v47 = vpop.permute.xlu0 %486 }
  0xc0   : > { %v549_v48 = vmul.f32 %v541_v14, %v491_v49  ;;  %v548_v53 = vmul.f32 %v540_v16, %v487_v47 }
  0xc1   : > { %968 = vbcast.lane.b32.xlu1 %v966_v42, 256  ;;  %940 = vbcast.lane.b32.xlu0 %v938_v11, 256 }
  0xc2   : > { %v585_v54 = vmul.f32 %v566_v50, %v549_v48  ;;  %v584_v57 = vmul.f32 %v1616_v1, %v548_v53 }
  0xc3   : > { %v502_v62 = vpop.permute.xlu1 %501  ;;  %v498_v27 = vpop.permute.xlu0 %497 }
  0xc4   : > { %v551_v63 = vmul.f32 %v543_v20, %v502_v62  ;;  %v550_v0 = vmul.f32 %v542_v21, %v498_v27  ;;  %v1700_v12 = vadd.f32 %v585_v54, %v533_v37  ;;  %v1702_v44 = vadd.f32 %v584_v57, %v532_v38 }
  0xc6   : > { %v587_v56 = vmul.f32 %v569_v60, %v551_v63  ;;  %v586_v2 = vmul.f32 %v1623_v5, %v550_v0  ;;  %v825_v3 = vrot.slane %v1702_v44, 1  ;;  %v826_v28 = vrot.slane %v1700_v12, 1 }
  0xc7   : > { %v608_v50 = vpop.permute.xlu1 %607  ;;  %v604_v8 = vpop.permute.xlu0 %603 }
  0xc8   : > { %v1709_v1 = vadd.f32 %v587_v56, %v535_v13  ;;  %v1711_v10 = vadd.f32 %v586_v2, %v534_v45  ;;  %v1716_v14 = vsel %vm309_vm4, %v825_v3, %v826_v28  ;;  %v775_v40 = vsub.f32 %v1469_v29, %v608_v50 }
  0xc9   : > { %v774_v18 = vsub.f32 %v1469_v29, %v604_v8  ;;  %v1178_v3 = vmul.f32 -1.442695, %v1432_v15 }
  0xca   : > { %v828_v51 = vrot.slane %v1711_v10, 1  ;;  %v829_v60 = vrot.slane %v1709_v1, 1 }
  0xcb   : > { %v652_v5 = vpop.permute.xlu1 %651  ;;  %v648_v16 = vpop.permute.xlu0 %647  ;;  %1263 = vpow2.f32 %v1178_v3 }
  0xcc   : > { %v1723_v17 = vsel %vm309_vm4, %v828_v51, %v829_v60  ;;  %v799_v43 = vsub.f32 %v652_v5, %v1469_v29  ;;  %v798_v24 = vsub.f32 %v648_v16, %v1469_v29 }
  0xcf   : > { %v696_v19 = vpop.permute.xlu1 %695  ;;  %v692_v20 = vpop.permute.xlu0 %691 }
  0xd0   : > { %v783_v21 = vmul.f32 %v775_v40, %v696_v19  ;;  %v782_v22 = vmul.f32 %v774_v18, %v692_v20 }
  0xd2   : > { %v791_v25 = vmul.f32 %v783_v21, %v1635_v30  ;;  %v790_v26 = vmul.f32 %v782_v22, %v1637_v35 }
  0xd3   : > { %v740_v31 = vpop.permute.xlu1 %739  ;;  %v736_v23 = vpop.permute.xlu0 %735 }
  0xd4   : > { %v807_v32 = vmul.f32 %v799_v43, %v740_v31  ;;  %v806_v37 = vmul.f32 %v798_v24, %v736_v23 }
  0xd6   : > { %v843_v38 = vmul.f32 %v823_v46, %v807_v32  ;;  %v842_v9 = vmul.f32 %v1657_v59, %v806_v37  ;;  %v1264_v37 = vpop.eup %1263 }
  0xd7   : > { %v381_v39 = vpop.permute.xlu1 %380  ;;  %v377_v4 = vpop.permute.xlu0 %376 }
  0xd8   : > { %v851_v41 = vadd.f32 %v843_v38, %v791_v25  ;;  %v1734_v42 = vadd.f32 %v842_v9, %v790_v26  ;;  %v521_v11 = vsub.f32 %v1484_v36, %v381_v39  ;;  %v520_v13 = vsub.f32 %v1484_v36, %v377_v4 }
  0xda   : > { %v999_v45 = vrot.slane %v851_v41, 1  ;;  %v998_v35 = vrot.slane %v1734_v42, 1 }
  0xdb   : > { %v425_v49 = vpop.permute.xlu1 %424  ;;  %v421_v47 = vpop.permute.xlu0 %420 }
  0xdc   : > { %v545_v48 = vsub.f32 %v425_v49, %v1484_v36  ;;  %v544_v30 = vsub.f32 %v421_v47, %v1484_v36  ;;  %v1742_v46 = vsel %vm309_vm4, %v998_v35, %v999_v45 }
  0xdf   : > { %v619_v59 = vpop.permute.xlu1 %618  ;;  %v615_v53 = vpop.permute.xlu0 %614 }
  0xe0   : > { %v777_v54 = vsub.f32 %v1478_v33, %v619_v59  ;;  %v776_v57 = vsub.f32 %v1478_v33, %v615_v53 }
  0xe3   : > { %v630_v62 = vpop.permute.xlu1 %629  ;;  %v626_v27 = vpop.permute.xlu0 %625 }
  0xe4   : > { %v778_v38 = vsub.f32 %v1481_v34, %v626_v27 }
  0xe7   : > { %v663_v63 = vpop.permute.xlu1 %662  ;;  %v659_v0 = vpop.permute.xlu0 %658 }
  0xe8   : > { %v801_v35 = vsub.f32 %v663_v63, %v1478_v33  ;;  %v800_v49 = vsub.f32 %v659_v0, %v1478_v33 }
  0xeb   : > { %v674_v56 = vpop.permute.xlu1 %673  ;;  %v670_v2 = vpop.permute.xlu0 %669 }
  0xef   : > { %v469_v50 = vpop.permute.xlu1 %468  ;;  %v465_v8 = vpop.permute.xlu0 %464 }
  0xf0   : > { %v529_v51 = vmul.f32 %v521_v11, %v469_v50  ;;  %v528_v5 = vmul.f32 %v520_v13, %v465_v8  ;;  %v184_v13 = vadd.f32 1.0, %v1264_v37 }
  0xf2   : > { %v537_v16 = vmul.f32 %v529_v51, %v1647_v52  ;;  %v536_v40 = vmul.f32 %v528_v5, %v1652_v58  ;;  %v779_v58 = vsub.f32 %v1481_v34, %v630_v62  ;;  %1265 = vrcp.f32 %v184_v13 }
  0xf3   : > { %v513_v18 = vpop.permute.xlu1 %512  ;;  %v509_v19 = vpop.permute.xlu0 %508 }
  0xf4   : > { %v553_v20 = vmul.f32 %v545_v48, %v513_v18  ;;  %v552_v21 = vmul.f32 %v544_v30, %v509_v19 }
  0xf6   : > { %v589_v22 = vmul.f32 %v572_v61, %v553_v20  ;;  %v588_v43 = vmul.f32 %v1668_v6, %v552_v21 }
  0xf7   : > { %v707_v24 = vpop.permute.xlu1 %706  ;;  %v703_v25 = vpop.permute.xlu0 %702 }
  0xf8   : > { %v785_v26 = vmul.f32 %v777_v54, %v707_v24  ;;  %v784_v31 = vmul.f32 %v776_v57, %v703_v25  ;;  %v1752_v23 = vadd.f32 %v589_v22, %v537_v16  ;;  %v1754_v32 = vadd.f32 %v588_v43, %v536_v40 }
  0xf9   : > { %v803_v54 = vsub.f32 %v674_v56, %v1481_v34  ;;  %v802_v57 = vsub.f32 %v670_v2, %v1481_v34 }
  0xfa   : > { %v793_v9 = vmul.f32 %v785_v26, %v1700_v12  ;;  %v792_v52 = vmul.f32 %v784_v31, %v1702_v44  ;;  %v831_v61 = vrot.slane %v1754_v32, 1  ;;  %v832_v6 = vrot.slane %v1752_v23, 1 }
  0xfb   : > { %v718_v39 = vpop.permute.xlu1 %717  ;;  %v714_v4 = vpop.permute.xlu0 %713 }
  0xfc   : > { %v787_v41 = vmul.f32 %v779_v58, %v718_v39  ;;  %v786_v11 = vmul.f32 %v778_v38, %v714_v4  ;;  %v1765_v45 = vsel %vm309_vm4, %v831_v61, %v832_v6  ;;  %v1266_v18 = vpop.eup %1265 }
  0xfd   : > { %v187_v25 = vmul.f32 %v1266_v18, %v1432_v15 }
  0xfe   : > { %v795_v44 = vmul.f32 %v787_v41, %v1709_v1  ;;  %v794_v47 = vmul.f32 %v786_v11, %v1711_v10 }
  0xff   : > { %v751_v48 = vpop.permute.xlu1 %750  ;;  %v747_v30 = vpop.permute.xlu0 %746 }
 0x100   : > { %v809_v59 = vmul.f32 %v801_v35, %v751_v48  ;;  %v808_v53 = vmul.f32 %v800_v49, %v747_v30 }
 0x102   : > { %v845_v62 = vmul.f32 %v826_v28, %v809_v59  ;;  %v844_v27 = vmul.f32 %v1716_v14, %v808_v53 }
 0x103   : > { %v762_v63 = vpop.permute.xlu1 %761  ;;  %v758_v0 = vpop.permute.xlu0 %757 }
 0x104   : > { %v853_v3 = vadd.f32 %v845_v62, %v793_v9  ;;  %v811_v50 = vmul.f32 %v803_v54, %v762_v63  ;;  %v810_v8 = vmul.f32 %v802_v57, %v758_v0  ;;  %v1776_v10 = vadd.f32 %v844_v27, %v792_v52 }
 0x106   : > { %v1002_v51 = vrot.slane %v853_v3, 1  ;;  %v847_v5 = vmul.f32 %v829_v60, %v811_v50  ;;  %v846_v56 = vmul.f32 %v1723_v17, %v810_v8  ;;  %v1001_v2 = vrot.slane %v1776_v10, 1 }
 0x107   : > { %v892_v16 = vpop.permute.xlu1 %891  ;;  %v864_v12 = vpop.permute.xlu0 %863 }
 0x108   : > { %v855_v28 = vadd.f32 %v847_v5, %v795_v44  ;;  %v854_v40 = vadd.f32 %v846_v56, %v794_v47  ;;  %v1783_v14 = vsel %vm309_vm4, %v1001_v2, %v1002_v51  ;;  %v982_v20 = vsub.f32 %v892_v16, %v1469_v29 }
 0x109   : > { %v970_v21 = vsub.f32 %v1469_v29, %v864_v12 }
 0x10a   : > { %v1005_v19 = vrot.slane %v855_v28, 1  ;;  %v1004_v22 = vrot.slane %v854_v40, 1 }
 0x10b   : > { %v948_v1 = vpop.permute.xlu1 %947  ;;  %v920_v60 = vpop.permute.xlu0 %919 }
 0x10c   : > { %v986_v43 = vmul.f32 %v982_v20, %v948_v1  ;;  %v974_v17 = vmul.f32 %v970_v21, %v920_v60  ;;  %v1006_v24 = vsel %vm309_vm4, %v1004_v22, %v1005_v19 }
 0x10e   : > { %v1014_v26 = vmul.f32 %v1742_v46, %v986_v43  ;;  %v978_v31 = vmul.f32 %v974_v17, %v1734_v42 }
 0x10f   : > { %v641_v37 = vpop.permute.xlu1 %640  ;;  %v637_v58 = vpop.permute.xlu0 %636 }
 0x110   : > { %v1018_v38 = vadd.f32 %v1014_v26, %v978_v31  ;;  %v781_v46 = vsub.f32 %v1484_v36, %v641_v37  ;;  %v780_v42 = vsub.f32 %v1484_v36, %v637_v58  ;;  %v180_v31 = vld [vmem:[%s1863_s2] sm:$0xff] }
 0x112   : > { %v1213_v29 = vpack.c.bf16 %v1018_v38, %v187_v25 }
 0x113   : > { %v685_v9 = vpop.permute.xlu1 %684  ;;  %v681_v52 = vpop.permute.xlu0 %680 }
 0x114   : > { %1215 = vmatpush3.bf16.msk.msra.mxu0 %vm1214_vm12, %v1213_v29  ;;  %v805_v49 = vsub.f32 %v685_v9, %v1484_v36  ;;  %v804_v44 = vsub.f32 %v681_v52, %v1484_v36 }
 0x115   : > { %1216 = vmatprep.subr.bf16.mxu0 %v1333_v55 }
 0x117   : > { %v878_v61 = vpop.permute.xlu1 %877  ;;  %v871_v39 = vpop.permute.xlu0 %870 }
 0x118   : > { %v972_v54 = vsub.f32 %v1481_v34, %v878_v61  ;;  %v971_v57 = vsub.f32 %v1478_v33, %v871_v39 }
 0x11b   : > { %v906_v4 = vpop.permute.xlu1 %905  ;;  %v899_v15 = vpop.permute.xlu0 %898 }
 0x11c   : > { %v983_v5 = vsub.f32 %v899_v15, %v1478_v33 }
 0x11f   : > { %v729_v41 = vpop.permute.xlu1 %728  ;;  %v725_v11 = vpop.permute.xlu0 %724 }
 0x120   : > { %v789_v13 = vmul.f32 %v781_v46, %v729_v41  ;;  %v788_v35 = vmul.f32 %v780_v42, %v725_v11 }
 0x122   : > { %v797_v47 = vmul.f32 %v789_v13, %v1752_v23  ;;  %v796_v55 = vmul.f32 %v788_v35, %v1754_v32  ;;  %v984_v32 = vsub.f32 %v906_v4, %v1481_v34 }
 0x123   : > { %v773_v48 = vpop.permute.xlu1 %772  ;;  %v769_v30 = vpop.permute.xlu0 %768 }
 0x124   : > { %v813_v59 = vmul.f32 %v805_v49, %v773_v48  ;;  %v812_v53 = vmul.f32 %v804_v44, %v769_v30 }
 0x126   : > { %v849_v62 = vmul.f32 %v832_v6, %v813_v59  ;;  %v848_v27 = vmul.f32 %v1765_v45, %v812_v53 }
 0x127   : > { %v934_v63 = vpop.permute.xlu1 %933  ;;  %v927_v0 = vpop.permute.xlu0 %926 }
 0x128   : > { %v857_v3 = vadd.f32 %v849_v62, %v797_v47  ;;  %v856_v50 = vadd.f32 %v848_v27, %v796_v55  ;;  %v976_v8 = vmul.f32 %v972_v54, %v934_v63  ;;  %v975_v51 = vmul.f32 %v971_v57, %v927_v0 }
 0x12a   : > { %v1008_v56 = vrot.slane %v857_v3, 1  ;;  %v1007_v2 = vrot.slane %v856_v50, 1  ;;  %v980_v16 = vmul.f32 %v976_v8, %v854_v40  ;;  %v979_v12 = vmul.f32 %v975_v51, %v1776_v10 }
 0x12b   : > { %v962_v28 = vpop.permute.xlu1 %961  ;;  %v955_v23 = vpop.permute.xlu0 %954 }
 0x12c   : > { %v988_v6 = vmul.f32 %v984_v32, %v962_v28  ;;  %v987_v18 = vmul.f32 %v983_v5, %v955_v23  ;;  %v1009_v45 = vsel %vm309_vm4, %v1007_v2, %v1008_v56 }
 0x12e   : > { %v1016_v19 = vmul.f32 %v1006_v24, %v988_v6  ;;  %v1015_v20 = vmul.f32 %v1783_v14, %v987_v18 }
 0x12f   : > { %v913_v21 = vpop.permute.xlu1 %912  ;;  %v885_v22 = vpop.permute.xlu0 %884 }
 0x130   : > { %v1020_v1 = vadd.f32 %v1016_v19, %v980_v16  ;;  %v1019_v34 = vadd.f32 %v1015_v20, %v979_v12  ;;  %v985_v33 = vsub.f32 %v913_v21, %v1484_v36  ;;  %v973_v40 = vsub.f32 %v1484_v36, %v885_v22 }
 0x132   : > { %v1217_v60 = vpack.c.bf16 %v1020_v1, %v1019_v34 }
 0x133   : > { %v969_v10 = vpop.permute.xlu1 %968  ;;  %v941_v43 = vpop.permute.xlu0 %940 }
 0x134   : > { %v989_v17 = vmul.f32 %v985_v33, %v969_v10  ;;  %v977_v25 = vmul.f32 %v973_v40, %v941_v43  ;;  %1218 = vmatpush3.bf16.msra.mxu0 %v1217_v60 }
 0x135   : > { %1207 = vmatprep.subr.mxu0 %v1332_v7 }
 0x136   : > { %v1017_v24 = vmul.f32 %v1009_v45, %v989_v17  ;;  %v981_v14 = vmul.f32 %v977_v25, %v856_v50 }
 0x138   : > { %v1021_v26 = vadd.f32 %v1017_v24, %v981_v14 }
 0x13a   : > { %1208 = vmatpush3.msra.mxu0 %v1021_v26 }
 0x13b   : > { %1210 = vmatmul.mubr.msk.f32.vlgmr.msra.gmra.mrb[0].mxu0 %vm1024_vm13, %v180_v31 }
 0x20e   : > { %v1094_v36 = vpop.f32.mrb[0].mxu0 }
 0x20f   : > { %1098 = vst [vmem:[%s161_s20] sm:$0xff] %v1094_v36  ;;  %v1211_v7 = vpop.f32.mrb[1].mxu0 }
 0x210   : > { %1280 = shalt.err (!%p1277_p3)
}
 0x211   : > { %s1281_s6 = scalar_lea.hbm %s1821_s28, 128  ;;  %s1285_s9 = scalar_lea.hbm %s1864_s3, 512 }
 0x212   : > { %p1282_p4 = scmp.ne.s32.totalorder %s1821_s28, %s1281_s6  ;;  %p1286_p9 = scmp.lt.u32.totalorder %s1821_s28, %s1864_s3 }
 0x213   : > { %p1287_p10 = scmp.lt.u32.totalorder %s1285_s9, %s1281_s6  ;;  %p1289_p12 = scmp.lt.u32.totalorder %s1281_s6, %s1821_s28 }
 0x214   : > { %p1283_p7 = pnand %p1282_p4, %p1395_p5 }
 0x215   : > { %p1288_p11 = por %p1287_p10, %p1286_p9 }
 0x216   : > { %p1284_p8 = pneg %p1283_p7 }
 0x217   : > { %p1290_p13 = por %p1289_p12, %p1288_p11 }
 0x219   : > { %p1291_p0 = pnand %p1290_p13, %p1284_p8 }
 0x21b   : > { %1294 = shalt.err (!%p1291_p0)
}
 0x21c   : > { %1219 = dma.vmem_to_hbm [thread:$0]  (%p1395_p5), %s1816_s24, 128, %s1821_s28, %s1100_s29  }
 0x21d PF: > { %p1225_p1 = scmp.ge.s32.totalorder %s1329_s15, 2  ;;  %s1125_s17 = sand.u32 1, %s1317_s12  }
 0x21e   : > { %s1126_s19 = scalar_lea.sflag [#allocation3], %s1125_s17 }
 0x21f   : > { %p1222_p2 = pnand %p1225_p1, %p1399_p6 }
 0x221   : > { %1312 = dma.done.wait (!%p1222_p2), %s1126_s19, 128  }
 0x222   : > { %1314 = vsyncadd (!%p1222_p2), %s1126_s19, 4294967168  ;;  %p13_p3 = scmp.ge.s32.totalorder %s1382_s18, 6   ;;  %s1867_s12 = smov %s1321_s13 }
 0x223   : > { %s1868_s13 = smov %s1325_s14  ;;  %s1869_s14 = smov %s1393_s21 }
 0x224   : > { %s1870_s15 = smov %s1382_s18  ;;  %15 = sbr.rel (!%p13_p3) target bundleno = 3 (0x3), region = 67 }
 0x22b   :  { %1131 = vsyncpa [#allocation3], 1 }
 0x22c   :  { %1133 = vsyncpa [#allocation3 + $0x1], 1 }

</bundles_post_ra>
